<compile_context>
chip_gen: v7x
topology: tpu7x:2x2x1
jax: 0.10.0
libtpu: 0.0.40
codegen_flags: <defaults>
</compile_context>

<pallas_src>
import functools

import jax
import jax.numpy as jnp
from jax import lax
from jax.experimental import pallas as pl
from jax.experimental.pallas import tpu as pltpu


def _rmsnorm_kernel(x_ref, w_ref, o_ref, *, eps, hidden_size):
    # x_ref: (TILE_ROWS, H) block of tokens; w_ref: (1, H) weight; o_ref: (TILE_ROWS, H)
    x = x_ref[...].astype(jnp.float32)
    w = w_ref[...].astype(jnp.float32)

    # MaxPool1d(kernel=H, stride=1) over |x| == per-row max of |x|.
    amax = jnp.max(jnp.abs(x), axis=-1, keepdims=True)          # (T, 1)
    # Exact reciprocal of the per-row scalar column (only T elements -> cheap).
    inv_amax = 1.0 / amax                                        # (T, 1)

    # Fold the two row scalars:
    #   var = mean((x/amax)^2) = sum(x^2) * inv_amax^2 / H
    ssq = jnp.sum(x * x, axis=-1, keepdims=True)                 # (T, 1)
    var = ssq * (inv_amax * inv_amax) * (1.0 / hidden_size)
    scale = inv_amax * lax.rsqrt(var + eps)                      # (T, 1)

    # Single full-tile elementwise pass: out = w * x * scale.
    o_ref[...] = (w * (x * scale)).astype(o_ref.dtype)


def _choose_tile_rows(n_rows, hidden):
    """Row-tile size targeting ~4 MiB of f32 working set per block.

    With double-buffered in+out blocks plus the in-kernel f32 temporaries this stays
    well under v7x's 64 MiB VMEM while being large enough to hit the HBM roofline
    on v5e/v6e/v7x.
    """
    target_f32_bytes = 4 * 1024 * 1024
    tr = target_f32_bytes // (hidden * 4)
    tr = max(8, (tr // 8) * 8)          # sublane-aligned
    tr = min(tr, 2048)
    # Don't use a tile larger than the (8-aligned) number of rows present.
    tr = min(tr, max(8, (n_rows // 8) * 8))
    return int(tr)


def llama_rmsnorm(x, weight, eps=1e-6, tile_rows=None):
    """x: (..., H) array; weight: (H,) array. Returns same shape/dtype as x."""
    orig_shape = x.shape
    H = orig_shape[-1]
    x2 = x.reshape(-1, H)
    R = x2.shape[0]
    itemsize = jnp.dtype(x.dtype).itemsize

    if tile_rows is None:
        tile_rows = _choose_tile_rows(R, H)

    w2 = weight.reshape(1, H)
    grid = (pl.cdiv(R, tile_rows),)      # ragged last block handled by Pallas (no jnp.pad)

    # Explicit VMEM budget: in+out blocks double-buffered + f32 temps + weight + margin.
    block_bytes = tile_rows * H * itemsize
    f32_block = tile_rows * H * 4
    vmem_limit = int(min(4 * block_bytes + 4 * f32_block + 8 * H * 4 + (2 << 20),
                         48 << 20))

    cost = pl.CostEstimate(
        flops=int(6 * R * H),
        transcendentals=int(2 * R),
        bytes_accessed=int(2 * R * H * itemsize + H * jnp.dtype(weight.dtype).itemsize),
    )

    out = pl.pallas_call(
        functools.partial(_rmsnorm_kernel, eps=eps, hidden_size=H),
        out_shape=jax.ShapeDtypeStruct((R, H), x.dtype),
        grid_spec=pltpu.PrefetchScalarGridSpec(
            num_scalar_prefetch=0,
            grid=grid,
            in_specs=[
                pl.BlockSpec((tile_rows, H), lambda i: (i, 0)),
                pl.BlockSpec((1, H), lambda i: (0, 0)),
            ],
            out_specs=pl.BlockSpec((tile_rows, H), lambda i: (i, 0)),
        ),
        compiler_params=pltpu.CompilerParams(
            dimension_semantics=("parallel",),   # sharded across 2 TCs on v7x
            vmem_limit_bytes=vmem_limit,
        ),
        cost_estimate=cost,
    )(x2, w2)

    return out.reshape(orig_shape)


def _reference(x, weight, eps=1e-6):
    xf = x.astype(jnp.float32)
    amax = jnp.max(jnp.abs(xf), axis=-1, keepdims=True)
    xn = xf / amax
    var = jnp.mean(xn * xn, axis=-1, keepdims=True)
    out = weight.astype(jnp.float32) * (xn * lax.rsqrt(var + eps))
    return out.astype(x.dtype)


if __name__ == "__main__":
    key = jax.random.PRNGKey(0)

    # Small shapes: batch=2, seq=8, hidden=32.
    B, S, H = 2, 8, 32
    x = jax.random.normal(key, (B, S, H), dtype=jnp.float32)
    weight = jnp.ones((H,), dtype=jnp.float32)  # nn.Parameter(torch.ones(hidden_size))

    out = llama_rmsnorm(x, weight, eps=1e-6)
    out = jax.block_until_ready(out)

    ref = _reference(x, weight, eps=1e-6)
    assert out.shape == x.shape and out.dtype == x.dtype
    assert jnp.allclose(out, ref, atol=1e-5, rtol=1e-5)

    # Ragged row count (R=15 not a multiple of the row tile): exercises the masked
    # last block instead of a wrapper-side jnp.pad copy.
    x2 = jax.random.normal(jax.random.PRNGKey(1), (3, 5, H), dtype=jnp.float32)
    out2 = jax.block_until_ready(llama_rmsnorm(x2, weight, eps=1e-6))
    ref2 = _reference(x2, weight, eps=1e-6)
    assert out2.shape == x2.shape
    assert jnp.allclose(out2, ref2, atol=1e-5, rtol=1e-5)

    print("KERNEL_OK")
</pallas_src>

<mosaic_0001>
module attributes {stable_mosaic.version = 11 : i64} {
  func.func @_rmsnorm_kernel(%arg0: i32, %arg1: memref<16x32xf32, #tpu.memory_space<vmem>>, %arg2: memref<1x32xf32, #tpu.memory_space<vmem>>, %arg3: memref<16x32xf32, #tpu.memory_space<vmem>>) attributes {dimension_semantics = [#tpu.dimension_semantics<parallel>], iteration_bounds = array<i64: 1>, scalar_prefetch = 0 : i64, scratch_operands = 0 : i64, tpu.core_type = #tpu.core_type<tc>, window_params = [{transform_indices = @transform_0, window_bounds = array<i64: 16, 32>}, {pipeline_mode = #tpu.pipeline_mode<synchronous>, transform_indices = @transform_1, window_bounds = array<i64: 1, 32>}, {transform_indices = @transform_2, window_bounds = array<i64: 16, 32>}]} {
    %c0 = arith.constant 0 : index
    %c0_0 = arith.constant 0 : index
    %0 = vector.load %arg1[%c0, %c0_0] : memref<16x32xf32, #tpu.memory_space<vmem>>, vector<16x32xf32>
    %c0_1 = arith.constant 0 : index
    %c0_2 = arith.constant 0 : index
    %1 = vector.load %arg2[%c0_1, %c0_2] : memref<1x32xf32, #tpu.memory_space<vmem>>, vector<1x32xf32>
    %2 = math.absf %0 : vector<16x32xf32>
    %cst = arith.constant dense<0xFF800000> : vector<16xf32>
    %3 = vector.multi_reduction <maximumf>, %2, %cst [1] : vector<16x32xf32> to vector<16xf32>
    %4 = vector.shape_cast %3 : vector<16xf32> to vector<16x1xf32>
    %cst_3 = arith.constant 1.000000e+00 : f32
    %5 = vector.broadcast %cst_3 : f32 to vector<16x1xf32>
    %6 = arith.divf %5, %4 : vector<16x1xf32>
    %7 = arith.mulf %0, %0 : vector<16x32xf32>
    %cst_4 = arith.constant dense<0.000000e+00> : vector<16xf32>
    %8 = vector.multi_reduction <add>, %7, %cst_4 [1] : vector<16x32xf32> to vector<16xf32>
    %9 = vector.shape_cast %8 : vector<16xf32> to vector<16x1xf32>
    %10 = arith.mulf %6, %6 : vector<16x1xf32>
    %11 = arith.mulf %9, %10 : vector<16x1xf32>
    %cst_5 = arith.constant 3.125000e-02 : f32
    %12 = vector.broadcast %cst_5 : f32 to vector<16x1xf32>
    %13 = arith.mulf %11, %12 : vector<16x1xf32>
    %cst_6 = arith.constant 9.99999997E-7 : f32
    %14 = vector.broadcast %cst_6 : f32 to vector<16x1xf32>
    %15 = arith.addf %13, %14 : vector<16x1xf32>
    %16 = math.rsqrt %15 : vector<16x1xf32>
    %17 = arith.mulf %6, %16 : vector<16x1xf32>
    %18 = vector.broadcast %17 : vector<16x1xf32> to vector<16x32xf32>
    %19 = arith.mulf %0, %18 : vector<16x32xf32>
    %20 = vector.broadcast %1 : vector<1x32xf32> to vector<16x32xf32>
    %21 = arith.mulf %20, %19 : vector<16x32xf32>
    %c0_7 = arith.constant 0 : index
    %c0_8 = arith.constant 0 : index
    %22 = vector.load %arg3[%c0_7, %c0_8] : memref<16x32xf32, #tpu.memory_space<vmem>>, vector<16x32xf32>
    tpu.vector_store %arg3[%c0_7, %c0_8], %21 {strides = array<i32>} : memref<16x32xf32, #tpu.memory_space<vmem>>, vector<16x32xf32>,
    return
  }
  func.func @transform_0(%arg0: i32) -> (i32, i32) {
    %c0_i32 = arith.constant 0 : i32
    %c0_i32_0 = arith.constant 0 : i32
    return %arg0, %c0_i32 : i32, i32
  }
  func.func @transform_1(%arg0: i32) -> (i32, i32) {
    %c0_i32 = arith.constant 0 : i32
    %c0_i32_0 = arith.constant 0 : i32
    %c0_i32_1 = arith.constant 0 : i32
    return %c0_i32, %c0_i32_0 : i32, i32
  }
  func.func @transform_2(%arg0: i32) -> (i32, i32) {
    %c0_i32 = arith.constant 0 : i32
    %c0_i32_0 = arith.constant 0 : i32
    return %arg0, %c0_i32 : i32, i32
  }
}

</mosaic_0001>

<bundles_post_ra>
// kernel: tpu_custom_call.1
= control target key start
LH: loop header
LB: loop body
LE: loop exit
PB: predicated region body
PF: predicated region fallthrough
CT: control target
= control target key end

     0   :  { %7 = vsyncpa [#allocation3], 0  ;;  %s210_s0 = inlined_call_operand.hbm [shape: f32[16,32], index: 0, kind: input, shape index: {}]   ;;  %s211_s1 = inlined_call_operand.vmem [shape: f32[1,32], index: 1, kind: input, shape index: {}]   ;;  %s212_s2 = inlined_call_operand.hbm [shape: f32[16,32], index: 2, kind: output, shape index: {}]  }
   0x1   :  { %8 = vsyncpa [#allocation4], 0  ;;  %s152_s9 = smov [#allocation2]   ;;  %s104_s13 = scalar_lea.hbm %s210_s0, 256 }
   0x2   :  { %s14_s10 = sshll.u32 %s152_s9, 4  ;;  %p105_p0 = scmp.ne.s32.totalorder %s210_s0, %s104_s13  ;;  %s15_s10 = int_to_ptr.vmem [resolvable:$true] %s14_s10 }
   0x3   :  { %p108_p1 = scmp.lt.u32.totalorder %s104_s13, %s210_s0 }
   0x5   :  { %p110_p2 = pnand %p108_p1, %p105_p0 }
   0x7   :  { %113 = shalt.err (!%p110_p2)
}
   0x8   :  { %s114_s18 = scalar_lea.vmem %s15_s10, 256  ;;  %p119_p4 = scmp.lt.s32.totalorder %s15_s10, %s15_s10 }
   0x9   :  { %p115_p3 = scmp.ne.s32.totalorder %s15_s10, %s114_s18  ;;  %p120_p5 = scmp.lt.s32.totalorder %s114_s18, %s114_s18 }
   0xb   :  { %p121_p6 = por %p120_p5, %p119_p4 }
   0xd   :  { %p122_p7 = pnand %p121_p6, %p115_p3 }
   0xf   :  { %125 = shalt.err (!%p122_p7)
}
  0x10   :  { %s153_s19 = smov 128   ;;  %s154_s20 = smov 8  }
  0x11   :  { %20 = dma.hbm_to_vmem [thread:$0]  %s210_s0, 256, %s15_s10, [#allocation3], %s153_s19, %s153_s19, %s154_s20  }
  0x12   :  { %148 = dma.done.wait [#allocation3], 256  }
  0x13   :  { %149 = vsyncadd [#allocation3], 4294967040  ;;  %v26_v0 = vld [vmem:[#allocation2] sm:$0xff]  ;;  %vm31_vm0 = vcmask 261120   ;;  %v27_v1 = vld [vmem:[#allocation2 + $0x8] sm:$0xff]  ;;  %s155_s24 = smov [#allocation5]  }
  0x14   :  { %v29_v2 = vand.u32 2147483647, %v26_v0  ;;  %v30_v3 = vand.u32 2147483647, %v27_v1  ;;  %v42_v4 = vmul.f32 %v26_v0, %v26_v0  ;;  %v43_v5 = vmul.f32 %v27_v1, %v27_v1  ;;  %v91_v26 = vld [vmem:[%s211_s1] ss:$0 sm:$0xff] }
  0x15   :  { %s79_s25 = sshll.u32 %s155_s24, 4  ;;  %s80_s25 = int_to_ptr.vmem [resolvable:$true] %s79_s25 }
  0x16   :  { %v32_v6 = vsel %vm31_vm0, %v29_v2, -inf  ;;  %v44_v7 = vsel %vm31_vm0, %v42_v4, 0.0  ;;  %v35_v8 = vsel %vm31_vm0, %v30_v3, -inf  ;;  %v47_v9 = vsel %vm31_vm0, %v43_v5, 0.0  ;;  %s126_s26 = scalar_lea.vmem %s80_s25, 256  ;;  %p131_p9 = scmp.lt.s32.totalorder %s80_s25, %s80_s25 }
  0x17   :  { %33 = vmax.xlane.f32.xlu0 %v32_v6  ;;  %45 = vadd.xlane.f32.xlu1 %v44_v7  ;;  %p127_p8 = scmp.ne.s32.totalorder %s80_s25, %s126_s26  ;;  %p132_p10 = scmp.lt.s32.totalorder %s126_s26, %s126_s26 }
  0x19   :  { %p133_p11 = por %p132_p10, %p131_p9 }
  0x1b   :  { %36 = vmax.xlane.f32.xlu0 %v35_v8  ;;  %48 = vadd.xlane.f32.xlu1 %v47_v9  ;;  %p134_p12 = pnand %p133_p11, %p127_p8 }
  0xa4   :  { %v34_v10 = vpop.xlane.xlu0 %33  ;;  %v46_v12 = vpop.xlane.xlu1 %45 }
  0xa5   :  { %96 = vrcp.f32 %v34_v10 }
  0xa8   :  { %v37_v11 = vpop.xlane.xlu0 %36  ;;  %v49_v17 = vpop.xlane.xlu1 %48 }
  0xa9   :  { %98 = vrcp.f32 %v37_v11 }
  0xaf   :  { %v97_v13 = vpop.eup %96 }
  0xb0   :  { %v50_v14 = vmul.f32 %v97_v13, %v97_v13 }
  0xb2   :  { %v52_v15 = vmul.f32 %v50_v14, %v46_v12 }
  0xb3   :  { %v99_v16 = vpop.eup %98 }
  0xb4   :  { %v54_v18 = vmul.f32 0.03125, %v52_v15  ;;  %v51_v19 = vmul.f32 %v99_v16, %v99_v16 }
  0xb6   :  { %v56_v20 = vadd.f32 1e-06, %v54_v18  ;;  %v53_v21 = vmul.f32 %v51_v19, %v49_v17 }
  0xb8   :  { %100 = vrsqrt.f32 %v56_v20  ;;  %v55_v22 = vmul.f32 0.03125, %v53_v21 }
  0xba   :  { %v57_v23 = vadd.f32 1e-06, %v55_v22 }
  0xbc   :  { %102 = vrsqrt.f32 %v57_v23 }
  0xc2   :  { %v101_v24 = vpop.eup %100 }
  0xc3   :  { %v60_v25 = vmul.f32 %v101_v24, %v97_v13 }
  0xc5   :  { %v62_v27 = vmul.f32 %v60_v25, %v26_v0 }
  0xc6   :  { %v103_v28 = vpop.eup %102 }
  0xc7   :  { %v61_v29 = vmul.f32 %v103_v28, %v99_v16  ;;  %v70_v30 = vmul.f32 %v91_v26, %v62_v27 }
  0xc9   :  { %v63_v31 = vmul.f32 %v61_v29, %v27_v1  ;;  %72 = vst.msk [vmem:[#allocation5] sm:$0xff] %vm31_vm0, %v70_v30 }
  0xcb   :  { %v71_v32 = vmul.f32 %v91_v26, %v63_v31 }
  0xcd   :  { %73 = vst.msk [vmem:[#allocation5 + $0x8] sm:$0xff] %vm31_vm0, %v71_v32 }
  0xce   :  { %137 = shalt.err (!%p134_p12)
}
  0xcf   :  { %s138_s28 = scalar_lea.hbm %s212_s2, 256 }
  0xd0   :  { %p139_p13 = scmp.ne.s32.totalorder %s212_s2, %s138_s28  ;;  %p142_p0 = scmp.lt.u32.totalorder %s138_s28, %s212_s2 }
  0xd2   :  { %p144_p1 = pnand %p142_p0, %p139_p13 }
  0xd4   :  { %147 = shalt.err (!%p144_p1)
}
  0xd5   :  { %85 = dma.vmem_to_hbm [thread:$0]  %s80_s25, 256, %s212_s2, [#allocation4], %s153_s19, %s153_s19, %s154_s20  }
  0xd6   :  { %150 = dma.done.wait [#allocation4], 256  }
  0xd7   :  { %151 = vsyncadd [#allocation4], 4294967040 }
  0xd8   :  { %89 = vsyncpa [#allocation3], 1 }
  0xd9   :  { %90 = vsyncpa [#allocation4], 1 }

</bundles_post_ra>
